<compile_context>
chip_gen: v7x
topology: tpu7x:2x2x1
jax: 0.10.0
libtpu: 0.0.40
codegen_flags: <defaults>
</compile_context>

<pallas_src>
import jax
import jax.numpy as jnp
from jax.experimental import pallas as pl
from jax.experimental.pallas import tpu as pltpu

_LANES = 128


def _soft_dice_stats_kernel(x_ref, y_ref, inter_ref, spred_ref, sgt_ref):
    """Accumulate per-(b, c) intersect / sum_pred / sum_gt (lane-resident)."""
    s = pl.program_id(1)

    @pl.when(s == 0)
    def _init():
        inter_ref[...] = jnp.zeros_like(inter_ref)
        spred_ref[...] = jnp.zeros_like(spred_ref)
        sgt_ref[...] = jnp.zeros_like(sgt_ref)

    x = x_ref[...].astype(jnp.float32)          # (1, C, T, 128) logits
    y = y_ref[...]                              # (1, 1, T, 128) int32 labels

    # softmax over the channel axis (apply_nonlin = softmax_helper_dim1),
    # fused here so raw (possibly bf16) logits stream straight from HBM.
    # One EUP reciprocal per voxel, then C VPU multiplies (cheaper than C
    # per-channel divides).
    m = jnp.max(x, axis=1, keepdims=True)                   # (1, 1, T, 128)
    e = jnp.exp(x - m)                                      # (1, C, T, 128)
    inv_denom = 1.0 / jnp.sum(e, axis=1, keepdims=True)     # (1, 1, T, 128)
    p = e * inv_denom                                       # softmax probs

    # Label mask against the channel index (equivalent to torch scatter_ onto
    # a zero bool tensor).  NOTE: labels outside [0, C) produce an all-zero
    # one-hot row (torch scatter_ would error).
    c_ids = jax.lax.broadcasted_iota(jnp.int32, p.shape, dimension=1)
    mask = jnp.broadcast_to(y, p.shape) == c_ids            # (1, C, T, 128)

    # Reduce only the chunk (sublane) axis per tile; the single 128-lane
    # reduce happens once outside the kernel.  Accumulate directly into the
    # resident output blocks (same block index across the spatial axis).
    inter_ref[...] += jnp.sum(jnp.where(mask, p, 0.0), axis=2)   # (1, C, 128)
    spred_ref[...] += jnp.sum(p, axis=2)
    sgt_ref[...] += jnp.sum(mask.astype(jnp.float32), axis=2)


def _pick_tile_chunks(n_chunks, per_chunk_bytes, budget_bytes):
    """Largest spatial tile (in 128-lane chunks) whose VMEM footprint fits
    `budget_bytes`; sublane-aligned (multiple of 8) divisor of n_chunks
    unless the whole spatial axis fits in one tile."""
    cap = max(1, budget_bytes // per_chunk_bytes)
    if n_chunks <= cap:
        return n_chunks
    d = (cap // 8) * 8
    while d >= 8:
        if n_chunks % d == 0:
            return d
        d -= 8
    return n_chunks  # rare fallback: no aligned divisor -> whole axis


def soft_dice_loss(x, y, *, smooth=0.0, tile_budget_bytes=28 << 20):
    """MemoryEfficientSoftDiceLoss forward as configured inside bDiceLoss.

    x: (B, C, H, W) raw network logits (any float dtype; kept as-is in HBM).
    y: (B, H, W) or (B, 1, H, W) integer class map with values in [0, C).
    Returns scalar float32: -mean_{b,c} dice(b, c).
    ddp=False in bDiceLoss, so no cross-device reduction is required.
    """
    B, C, H, W = x.shape
    S = H * W
    if y.ndim == x.ndim:                       # (B, 1, H, W) -> (B, H, W)
        y = y.reshape(B, H, W)
    assert y.shape == (B, H, W), y.shape
    assert S % _LANES == 0, "pad spatial dims so H*W is a multiple of 128"
    n_chunks = S // _LANES

    # Keep x in its network dtype (bf16 halves the dominant HBM stream); the
    # kernel upcasts per tile.  Labels travel as int32 for layout simplicity.
    x_r = x.reshape(B, C, n_chunks, _LANES)
    y_r = y.astype(jnp.int32).reshape(B, 1, n_chunks, _LANES)

    # VMEM cost of one 128-lane chunk: double-buffered HBM inputs plus the
    # f32 working set of the fused softmax (exp/probs/mask-select ~ 2C lanes
    # of f32, + max & denom).
    x_bytes = jnp.dtype(x.dtype).itemsize
    in_chunk = _LANES * (C * x_bytes + 4)
    work_chunk = _LANES * 4 * (2 * C + 2)
    per_chunk = 2 * in_chunk + work_chunk
    ts = _pick_tile_chunks(n_chunks, per_chunk, tile_budget_bytes)
    grid = (B, n_chunks // ts)

    # Explicit VMEM budget with margin; stays under v7x's 64 MiB physical VMEM.
    vmem_limit = int(min(max(ts * per_chunk + (8 << 20), 32 << 20), 48 << 20))

    out_sds = jax.ShapeDtypeStruct((B, C, _LANES), jnp.float32)
    out_spec = pl.BlockSpec((1, C, _LANES), lambda b, s: (b, 0, 0))

    inter_l, spred_l, sgt_l = pl.pallas_call(
        _soft_dice_stats_kernel,
        out_shape=(out_sds, out_sds, out_sds),
        grid_spec=pltpu.PrefetchScalarGridSpec(
            num_scalar_prefetch=0,
            grid=grid,
            in_specs=[
                pl.BlockSpec((1, C, ts, _LANES), lambda b, s: (b, 0, s, 0)),
                pl.BlockSpec((1, 1, ts, _LANES), lambda b, s: (b, 0, s, 0)),
            ],
            out_specs=[out_spec, out_spec, out_spec],
        ),
        compiler_params=pltpu.CompilerParams(
            dimension_semantics=("parallel", "arbitrary"),
            vmem_limit_bytes=vmem_limit),
    )(x_r, y_r)

    # Tiny finalize in plain JAX: lane reduce + dice ratio + mean.
    intersect = inter_l.sum(-1)                  # (B, C)
    sum_pred = spred_l.sum(-1)
    sum_gt = sgt_l.sum(-1)
    dc = (2.0 * intersect + smooth) / jnp.maximum(
        sum_gt + sum_pred + smooth, 1e-8)        # torch.clip(..., 1e-8)
    return -jnp.mean(dc)


def _reference_b_dice_criterion(logits, labels, *, smooth=0.0):
    """Pure-JAX mirror of MemoryEfficientSoftDiceLoss(softmax, smooth=0)."""
    C = logits.shape[1]
    p = jax.nn.softmax(logits.astype(jnp.float32), axis=1)
    onehot = jax.nn.one_hot(labels.astype(jnp.int32), C, axis=1,
                            dtype=jnp.float32)
    axes = tuple(range(2, logits.ndim))
    intersect = jnp.sum(p * onehot, axis=axes)
    sum_pred = jnp.sum(p, axis=axes)
    sum_gt = jnp.sum(onehot, axis=axes)
    dc = (2.0 * intersect + smooth) / jnp.maximum(
        sum_gt + sum_pred + smooth, 1e-8)
    return -jnp.mean(dc)


if __name__ == "__main__":
    key = jax.random.PRNGKey(0)
    k1, k2, k3, k4 = jax.random.split(key, 4)

    # Small shape consistent with the module's forward (B, C, H, W) logits +
    # (B, H, W) class map.
    B, C, H, W = 2, 4, 16, 16
    logits = jax.random.normal(k1, (B, C, H, W), dtype=jnp.float32)
    labels = jax.random.randint(k2, (B, H, W), 0, C, dtype=jnp.int32)

    loss = jax.block_until_ready(soft_dice_loss(logits, labels))
    ref = jax.block_until_ready(_reference_b_dice_criterion(logits, labels))
    assert jnp.allclose(loss, ref, atol=1e-5, rtol=1e-5), (loss, ref)

    # Exercise the multi-step spatial accumulation path (bf16 logits, small
    # forced tile budget so the spatial grid axis has several iterations).
    B2, C2, H2, W2 = 1, 3, 64, 64
    logits2 = jax.random.normal(k3, (B2, C2, H2, W2), dtype=jnp.bfloat16)
    labels2 = jax.random.randint(k4, (B2, H2, W2), 0, C2, dtype=jnp.int32)
    loss2 = jax.block_until_ready(
        soft_dice_loss(logits2, labels2, tile_budget_bytes=64 * 1024))
    ref2 = jax.block_until_ready(_reference_b_dice_criterion(logits2, labels2))
    assert jnp.allclose(loss2, ref2, atol=2e-3, rtol=2e-3), (loss2, ref2)

    print("KERNEL_OK")
</pallas_src>

<mosaic_0001>
module attributes {stable_mosaic.version = 11 : i64} {
  func.func @_soft_dice_stats_kernel(%arg0: i32, %arg1: i32, %arg2: memref<1x4x2x128xf32, #tpu.memory_space<vmem>>, %arg3: memref<1x1x2x128xi32, #tpu.memory_space<vmem>>, %arg4: memref<1x4x128xf32, #tpu.memory_space<vmem>>, %arg5: memref<1x4x128xf32, #tpu.memory_space<vmem>>, %arg6: memref<1x4x128xf32, #tpu.memory_space<vmem>>) attributes {dimension_semantics = [#tpu.dimension_semantics<parallel>, #tpu.dimension_semantics<arbitrary>], iteration_bounds = array<i64: 2, 1>, scalar_prefetch = 0 : i64, scratch_operands = 0 : i64, tpu.core_type = #tpu.core_type<tc>, window_params = [{transform_indices = @transform_0, window_bounds = array<i64: 1, 4, 2, 128>}, {transform_indices = @transform_1, window_bounds = array<i64: 1, 1, 2, 128>}, {transform_indices = @transform_2, window_bounds = array<i64: 1, 4, 128>}, {transform_indices = @transform_3, window_bounds = array<i64: 1, 4, 128>}, {transform_indices = @transform_4, window_bounds = array<i64: 1, 4, 128>}]} {
    %c0_i32 = arith.constant 0 : i32
    %0 = arith.cmpi eq, %arg1, %c0_i32 : i32
    %1 = arith.extui %0 : i1 to i32
    %c0_i32_0 = arith.constant 0 : i32
    %2 = arith.cmpi ne, %1, %c0_i32_0 : i32
    scf.if %2 {
      %cst_32 = arith.constant 0.000000e+00 : f32
      %36 = vector.broadcast %cst_32 : f32 to vector<1x4x128xf32>
      %c0_33 = arith.constant 0 : index
      %c0_34 = arith.constant 0 : index
      %c0_35 = arith.constant 0 : index
      %37 = vector.load %arg4[%c0_33, %c0_34, %c0_35] : memref<1x4x128xf32, #tpu.memory_space<vmem>>, vector<1x4x128xf32>
      tpu.vector_store %arg4[%c0_33, %c0_34, %c0_35], %36 {strides = array<i32>} : memref<1x4x128xf32, #tpu.memory_space<vmem>>, vector<1x4x128xf32>,
      %cst_36 = arith.constant 0.000000e+00 : f32
      %38 = vector.broadcast %cst_36 : f32 to vector<1x4x128xf32>
      %c0_37 = arith.constant 0 : index
      %c0_38 = arith.constant 0 : index
      %c0_39 = arith.constant 0 : index
      %39 = vector.load %arg5[%c0_37, %c0_38, %c0_39] : memref<1x4x128xf32, #tpu.memory_space<vmem>>, vector<1x4x128xf32>
      tpu.vector_store %arg5[%c0_37, %c0_38, %c0_39], %38 {strides = array<i32>} : memref<1x4x128xf32, #tpu.memory_space<vmem>>, vector<1x4x128xf32>,
      %cst_40 = arith.constant 0.000000e+00 : f32
      %40 = vector.broadcast %cst_40 : f32 to vector<1x4x128xf32>
      %c0_41 = arith.constant 0 : index
      %c0_42 = arith.constant 0 : index
      %c0_43 = arith.constant 0 : index
      %41 = vector.load %arg6[%c0_41, %c0_42, %c0_43] : memref<1x4x128xf32, #tpu.memory_space<vmem>>, vector<1x4x128xf32>
      tpu.vector_store %arg6[%c0_41, %c0_42, %c0_43], %40 {strides = array<i32>} : memref<1x4x128xf32, #tpu.memory_space<vmem>>, vector<1x4x128xf32>,
    } else {
    }
    %c0 = arith.constant 0 : index
    %c0_1 = arith.constant 0 : index
    %c0_2 = arith.constant 0 : index
    %c0_3 = arith.constant 0 : index
    %3 = vector.load %arg2[%c0, %c0_1, %c0_2, %c0_3] : memref<1x4x2x128xf32, #tpu.memory_space<vmem>>, vector<1x4x2x128xf32>
    %c0_4 = arith.constant 0 : index
    %c0_5 = arith.constant 0 : index
    %c0_6 = arith.constant 0 : index
    %c0_7 = arith.constant 0 : index
    %4 = vector.load %arg3[%c0_4, %c0_5, %c0_6, %c0_7] : memref<1x1x2x128xi32, #tpu.memory_space<vmem>>, vector<1x1x2x128xi32>
    %cst = arith.constant dense<0xFF800000> : vector<1x2x128xf32>
    %5 = vector.multi_reduction <maximumf>, %3, %cst [1] : vector<1x4x2x128xf32> to vector<1x2x128xf32>
    %6 = vector.shape_cast %5 : vector<1x2x128xf32> to vector<1x1x2x128xf32>
    %7 = vector.broadcast %6 : vector<1x1x2x128xf32> to vector<1x4x2x128xf32>
    %8 = arith.subf %3, %7 : vector<1x4x2x128xf32>
    %9 = math.exp %8 : vector<1x4x2x128xf32>
    %cst_8 = arith.constant dense<0.000000e+00> : vector<1x2x128xf32>
    %10 = vector.multi_reduction <add>, %9, %cst_8 [1] : vector<1x4x2x128xf32> to vector<1x2x128xf32>
    %11 = vector.shape_cast %10 : vector<1x2x128xf32> to vector<1x1x2x128xf32>
    %cst_9 = arith.constant 1.000000e+00 : f32
    %12 = vector.broadcast %cst_9 : f32 to vector<1x1x2x128xf32>
    %13 = arith.divf %12, %11 : vector<1x1x2x128xf32>
    %14 = vector.broadcast %13 : vector<1x1x2x128xf32> to vector<1x4x2x128xf32>
    %15 = arith.mulf %9, %14 : vector<1x4x2x128xf32>
    %16 = tpu.iota {dimensions = array<i32: 1>} : vector<1x4x2x128xi32>
    %17 = vector.shape_cast %4 : vector<1x1x2x128xi32> to vector<1x1x2x128xi32>
    %18 = vector.broadcast %17 : vector<1x1x2x128xi32> to vector<1x4x2x128xi32>
    %19 = arith.cmpi eq, %18, %16 : vector<1x4x2x128xi32>
    %c0_10 = arith.constant 0 : index
    %c0_11 = arith.constant 0 : index
    %c0_12 = arith.constant 0 : index
    %20 = vector.load %arg4[%c0_10, %c0_11, %c0_12] : memref<1x4x128xf32, #tpu.memory_space<vmem>>, vector<1x4x128xf32>
    %cst_13 = arith.constant 0.000000e+00 : f32
    %21 = vector.broadcast %cst_13 : f32 to vector<1x4x2x128xf32>
    %22 = arith.select %19, %15, %21 : vector<1x4x2x128xi1>, vector<1x4x2x128xf32>
    %cst_14 = arith.constant dense<0.000000e+00> : vector<1x4x128xf32>
    %23 = vector.multi_reduction <add>, %22, %cst_14 [2] : vector<1x4x2x128xf32> to vector<1x4x128xf32>
    %24 = arith.addf %20, %23 : vector<1x4x128xf32>
    %c0_15 = arith.constant 0 : index
    %c0_16 = arith.constant 0 : index
    %c0_17 = arith.constant 0 : index
    %25 = vector.load %arg4[%c0_15, %c0_16, %c0_17] : memref<1x4x128xf32, #tpu.memory_space<vmem>>, vector<1x4x128xf32>
    tpu.vector_store %arg4[%c0_15, %c0_16, %c0_17], %24 {strides = array<i32>} : memref<1x4x128xf32, #tpu.memory_space<vmem>>, vector<1x4x128xf32>,
    %c0_18 = arith.constant 0 : index
    %c0_19 = arith.constant 0 : index
    %c0_20 = arith.constant 0 : index
    %26 = vector.load %arg5[%c0_18, %c0_19, %c0_20] : memref<1x4x128xf32, #tpu.memory_space<vmem>>, vector<1x4x128xf32>
    %cst_21 = arith.constant dense<0.000000e+00> : vector<1x4x128xf32>
    %27 = vector.multi_reduction <add>, %15, %cst_21 [2] : vector<1x4x2x128xf32> to vector<1x4x128xf32>
    %28 = arith.addf %26, %27 : vector<1x4x128xf32>
    %c0_22 = arith.constant 0 : index
    %c0_23 = arith.constant 0 : index
    %c0_24 = arith.constant 0 : index
    %29 = vector.load %arg5[%c0_22, %c0_23, %c0_24] : memref<1x4x128xf32, #tpu.memory_space<vmem>>, vector<1x4x128xf32>
    tpu.vector_store %arg5[%c0_22, %c0_23, %c0_24], %28 {strides = array<i32>} : memref<1x4x128xf32, #tpu.memory_space<vmem>>, vector<1x4x128xf32>,
    %c0_25 = arith.constant 0 : index
    %c0_26 = arith.constant 0 : index
    %c0_27 = arith.constant 0 : index
    %30 = vector.load %arg6[%c0_25, %c0_26, %c0_27] : memref<1x4x128xf32, #tpu.memory_space<vmem>>, vector<1x4x128xf32>
    %31 = arith.extui %19 : vector<1x4x2x128xi1> to vector<1x4x2x128xi32>
    %32 = arith.sitofp %31 : vector<1x4x2x128xi32> to vector<1x4x2x128xf32>
    %cst_28 = arith.constant dense<0.000000e+00> : vector<1x4x128xf32>
    %33 = vector.multi_reduction <add>, %32, %cst_28 [2] : vector<1x4x2x128xf32> to vector<1x4x128xf32>
    %34 = arith.addf %30, %33 : vector<1x4x128xf32>
    %c0_29 = arith.constant 0 : index
    %c0_30 = arith.constant 0 : index
    %c0_31 = arith.constant 0 : index
    %35 = vector.load %arg6[%c0_29, %c0_30, %c0_31] : memref<1x4x128xf32, #tpu.memory_space<vmem>>, vector<1x4x128xf32>
    tpu.vector_store %arg6[%c0_29, %c0_30, %c0_31], %34 {strides = array<i32>} : memref<1x4x128xf32, #tpu.memory_space<vmem>>, vector<1x4x128xf32>,
    return
  }
  func.func @transform_0(%arg0: i32, %arg1: i32) -> (i32, i32, i32, i32) {
    %c0_i32 = arith.constant 0 : i32
    %c0_i32_0 = arith.constant 0 : i32
    %c0_i32_1 = arith.constant 0 : i32
    return %arg0, %c0_i32, %arg1, %c0_i32_0 : i32, i32, i32, i32
  }
  func.func @transform_1(%arg0: i32, %arg1: i32) -> (i32, i32, i32, i32) {
    %c0_i32 = arith.constant 0 : i32
    %c0_i32_0 = arith.constant 0 : i32
    %c0_i32_1 = arith.constant 0 : i32
    return %arg0, %c0_i32, %arg1, %c0_i32_0 : i32, i32, i32, i32
  }
  func.func @transform_2(%arg0: i32, %arg1: i32) -> (i32, i32, i32) {
    %c0_i32 = arith.constant 0 : i32
    %c0_i32_0 = arith.constant 0 : i32
    %c0_i32_1 = arith.constant 0 : i32
    return %arg0, %c0_i32, %c0_i32_0 : i32, i32, i32
  }
  func.func @transform_3(%arg0: i32, %arg1: i32) -> (i32, i32, i32) {
    %c0_i32 = arith.constant 0 : i32
    %c0_i32_0 = arith.constant 0 : i32
    %c0_i32_1 = arith.constant 0 : i32
    return %arg0, %c0_i32, %c0_i32_0 : i32, i32, i32
  }
  func.func @transform_4(%arg0: i32, %arg1: i32) -> (i32, i32, i32) {
    %c0_i32 = arith.constant 0 : i32
    %c0_i32_0 = arith.constant 0 : i32
    %c0_i32_1 = arith.constant 0 : i32
    return %arg0, %c0_i32, %c0_i32_0 : i32, i32, i32
  }
}

</mosaic_0001>

<bundles_post_ra>
// kernel: tpu_custom_call.1
= control target key start
LH: loop header
LB: loop body
LE: loop exit
PB: predicated region body
PF: predicated region fallthrough
CT: control target
= control target key end

     0   :  { %s1405_s0 = inlined_call_operand.hbm [shape: f32[2,4,2,128], index: 0, kind: input, shape index: {}]   ;;  %s1406_s1 = inlined_call_operand.hbm [shape: s32[2,1,2,128], index: 1, kind: input, shape index: {}]   ;;  %s1407_s2 = inlined_call_operand.hbm [shape: f32[2,4,128], index: 2, kind: output, shape index: {0}]   ;;  %s1408_s3 = inlined_call_operand.hbm [shape: f32[2,4,128], index: 3, kind: output, shape index: {1}]   ;;  %s1409_s4 = inlined_call_operand.hbm [shape: f32[2,4,128], index: 4, kind: output, shape index: {2}]  }
   0x1   :  { %1413 = sst [smem:[#allocation15_spill]] %s1405_s0 }
   0x2   :  { %10 = vsyncpa [#allocation3], 0 }
   0x3   :  { %12 = vsyncpa [#allocation3 + $0x1], 0 }
   0x4   :  { %13 = vsyncpa [#allocation6], 0 }
   0x5   :  { %15 = vsyncpa [#allocation6 + $0x1], 0 }
   0x6   :  { %16 = vsyncpa [#allocation4], 0 }
   0x7   :  { %18 = vsyncpa [#allocation4 + $0x1], 0 }
   0x8   :  { %19 = vsyncpa [#allocation9], 0 }
   0x9   :  { %21 = vsyncpa [#allocation9 + $0x1], 0  ;;  %s1044_s15 = smov 0   ;;  %s1046_s16 = smov 0  }
   0xa   :  { %s1048_s17 = smov 0   ;;  %s1050_s18 = smov 0  }
   0xb   :  { %s1052_s19 = smov 0   ;;  %s1054_s20 = smov 0  }
   0xc LB: > { %s1075_s21 = sadd.s32 4294967295, %s1009_s20   ;;  %s1411_s22 = sadd.s32 4294967294, %s1009_s20   ;;  %s1009_s20 = sphi %s1054_s20, %s27_s20   ;;  %s1005_s19 = sphi %s1052_s19, %s1432_s19   ;;  %s1001_s18 = sphi %s1050_s18, %s1431_s18   ;;  %s997_s17 = sphi %s1048_s17, %s1430_s17   ;;  %s993_s16 = sphi %s1046_s16, %s1429_s16   ;;  %s989_s15 = sphi %s1044_s15, %s1428_s15  }
   0xd   : > { %s39_s23 = sadd.s32 1, %s1005_s19  ;;  %s48_s24 = sadd.s32 1, %s997_s17 }
   0xe   : > { %p41_p0 = scmp.ge.s32.totalorder %s39_s23, 2  ;;  %p55_p1 = scmp.ne.s32.totalorder %s997_s17, %s993_s16 }
   0xf   : > { %p56_p2 = scmp.eq.s32.totalorder %s1009_s20, 0  ;;  %p61_p3 = scmp.ne.s32.totalorder %s993_s16, %s989_s15 }
  0x10   : > { %s1434_s23 = smov (%p41_p0, %s39_s23), 0  ;;  %p62_p5 = scmp.eq.s32.totalorder %s1075_s21, 0 }
  0x11   : > { %p1087_p4 = por %p56_p2, %p55_p1  ;;  %s43_s26 = ssub.s32 %s1005_s19, %s1434_s23 }
  0x12   : > { %p113_p6 = scmp.eq.s32.totalorder %s1075_s21, 1  ;;  %p46_p7 = scmp.eq.s32.totalorder %s43_s26, 0 }
  0x13   : > { %p1095_p8 = por %p62_p5, %p61_p3  ;;  %p119_p10 = scmp.eq.s32.totalorder %s1411_s22, 1 }
  0x14   : > { %p1099_p9 = por %p113_p6, %p55_p1  ;;  %p740_p13 = scmp.lt.s32.totalorder %s1009_s20, 2 }
  0x15   : > { %s1415_s27 = scalar_select %p1095_p8, 1, 0 }
  0x16   : > { %s1416_s28 = scalar_select %p1099_p9, 1, 0 }
  0x17   : > { %s1106_s29 = scalar_select %p46_p7, %s997_s17, %s48_s24  }
  0x18   : > { %p1108_p11 = por %p119_p10, %p61_p3  ;;  %s1115_s5 = sand.u32 1, %s997_s17  }
  0x19   : > { %s689_s6 = sshll.u32 %s1115_s5, 3  ;;  %s712_s7 = sshll.u32 %s1005_s19, 7 }
  0x1a   : > { %s1417_s30 = scalar_select %p1108_p11, 1, 0 }
  0x1b   : > { %s1418_s0 = sld [smem:[#allocation15_spill]]  ;;  %s195_s11 = scalar_lea.vmem [#allocation2], %s689_s6 }
  0x1c   : > { %s203_s12 = sshll.u32 %s195_s11, 4  ;;  %p1128_p0 = pnand %p740_p13, %p1087_p4  ;;  %s1124_s12 = int_to_ptr.vmem [resolvable:$true] %s203_s12 }
  0x1d   : > { %s192_s14 = scalar_lea.sflag [#allocation3], %s1115_s5 }
  0x1e   : > { %p805_p3 = pneg %p1128_p0 }
  0x21   : > { %s1122_s10 = scalar_lea.hbm %s1418_s0, %s712_s7  ;;  %s808_s25 = scalar_lea.hbm %s1418_s0, 256 }
  0x22   : > { %s803_s24 = scalar_lea.hbm %s1122_s10, 128  ;;  %p809_p4 = scmp.lt.u32.totalorder %s1122_s10, %s1418_s0 }
  0x23   : > { %p804_p2 = scmp.ne.s32.totalorder %s1122_s10, %s803_s24  ;;  %p810_p7 = scmp.lt.u32.totalorder %s808_s25, %s803_s24 }
  0x24   : > { %p812_p13 = scmp.lt.u32.totalorder %s803_s24, %s1122_s10 }
  0x25   : > { %p806_p5 = pnand %p805_p3, %p804_p2  ;;  %p811_p10 = por %p810_p7, %p809_p4 }
  0x27   : > { %p807_p6 = pneg %p806_p5  ;;  %p813_p12 = por %p812_p13, %p811_p10 }
  0x29   : > { %p814_p1 = pnand %p813_p12, %p807_p6 }
  0x2b   : > { %817 = shalt.err (!%p814_p1)
}
  0x2c   : > { %s818_s9 = scalar_lea.vmem %s1124_s12, 128  ;;  %s1011_s11 = smov [#allocation2]  }
  0x2d   : > { %p819_p2 = scmp.ne.s32.totalorder %s1124_s12, %s818_s9  ;;  %s823_s26 = sshll.u32 %s1011_s11, 4  ;;  %s824_s26 = int_to_ptr.vmem [resolvable:$false] %s823_s26 }
  0x2e   : > { %s825_s6 = scalar_lea.vmem %s824_s26, 256  ;;  %p826_p9 = scmp.lt.s32.totalorder %s1124_s12, %s824_s26 }
  0x2f   : > { %p821_p5 = pnand %p819_p2, %p805_p3  ;;  %p827_p4 = scmp.lt.s32.totalorder %s825_s6, %s818_s9 }
  0x31   : > { %p822_p11 = pneg %p821_p5  ;;  %p828_p7 = por %p827_p4, %p826_p9 }
  0x33   : > { %p829_p10 = pnand %p828_p7, %p822_p11 }
  0x35   : > { %832 = shalt.err (!%p829_p10)
}
  0x36   : > { %s1012_s24 = smov 32   ;;  %s1013_s25 = smov 2  }
  0x37   : > { %726 = dma.hbm_to_vmem [thread:$0]  (!%p1128_p0), %s1122_s10, 128, %s1124_s12, %s192_s14, %s1012_s24, %s1012_s24, %s1013_s25  }
  0x38   : > { %p230_p12 = scmp.lt.s32.totalorder %s1009_s20, 3  ;;  %s692_s7 = sshll.u32 %s1115_s5, 1 }
  0x39   : > { %s693_s8 = sshll.u32 %s1005_s19, 5  ;;  %p1420_p9 = scmp.ge.s32.totalorder %s1009_s20, 1 }
  0x3a   : > { %s1173_s6 = scalar_lea.hbm %s1406_s1, %s693_s8  ;;  %s217_s22 = scalar_lea.vmem [#allocation5], %s692_s7 }
  0x3b   : > { %p1166_p11 = pnand %p1420_p9, %p230_p12  ;;  %s225_s0 = sshll.u32 %s217_s22, 4  ;;  %s226_s0 = int_to_ptr.vmem [resolvable:$true] %s225_s0 }
  0x3c   : > { %s214_s10 = scalar_lea.sflag [#allocation6], %s1115_s5  ;;  %s833_s12 = scalar_lea.hbm %s1173_s6, 32 }
  0x3d   : > { %s1421_s9 = scalar_select %p1166_p11, 1, 0 }
  0x3e   : > { %p834_p1 = scmp.ne.s32.totalorder %s1173_s6, %s833_s12  ;;  %s838_s25 = scalar_lea.hbm %s1406_s1, 64 }
  0x3f   : > { %p839_p2 = scmp.lt.u32.totalorder %s1173_s6, %s1406_s1  ;;  %p840_p5 = scmp.lt.u32.totalorder %s838_s25, %s833_s12 }
  0x40   : > { %p836_p6 = pnand %p834_p1, %p805_p3  ;;  %p842_p7 = scmp.lt.u32.totalorder %s833_s12, %s1173_s6 }
  0x41   : > { %p841_p4 = por %p840_p5, %p839_p2 }
  0x42   : > { %p837_p13 = pneg %p836_p6 }
  0x43   : > { %p843_p10 = por %p842_p7, %p841_p4 }
  0x45   : > { %p844_p12 = pnand %p843_p10, %p837_p13 }
  0x47   : > { %847 = shalt.err (!%p844_p12)
}
  0x48   : > { %s848_s22 = scalar_lea.vmem %s226_s0, 32  ;;  %s1014_s5 = smov [#allocation5]  }
  0x49   : > { %p849_p9 = scmp.ne.s32.totalorder %s226_s0, %s848_s22  ;;  %s853_s7 = sshll.u32 %s1014_s5, 4  ;;  %s854_s7 = int_to_ptr.vmem [resolvable:$false] %s853_s7 }
  0x4a   : > { %s855_s26 = scalar_lea.vmem %s854_s7, 64  ;;  %p856_p8 = scmp.lt.s32.totalorder %s226_s0, %s854_s7 }
  0x4b   : > { %p851_p1 = pnand %p849_p9, %p805_p3  ;;  %p857_p11 = scmp.lt.s32.totalorder %s855_s26, %s848_s22 }
  0x4d   : > { %p852_p6 = pneg %p851_p1  ;;  %p858_p2 = por %p857_p11, %p856_p8 }
  0x4f   : > { %p859_p5 = pnand %p858_p2, %p852_p6 }
  0x51   : > { %862 = shalt.err (!%p859_p5)
}
  0x52   : > { %729 = dma.hbm_to_vmem [thread:$0]  (!%p1128_p0), %s1173_s6, 32, %s226_s0, %s214_s10  }
  0x53   : > { %p1422_p13 = scmp.ne.s32.totalorder %s1421_s9, 0 }
  0x54   : > { %s1198_s12 = sand.u32 (!%p1422_p13), 1, %s993_s16   ;;  %p1423_p3 = scmp.ne.s32.totalorder (!%p1422_p13), %s1415_s27, 0 }
  0x55   : > { %234 = sbr.rel (%p1422_p13) target bundleno = 218 (0xda), region = 28  ;;  %s695_s14 = sshll.u32 (!%p1422_p13), %s1198_s12, 3 }
  0x56   : > { %s237_s24 = scalar_lea.sflag (!%p1422_p13), [#allocation3], %s1198_s12  ;;  %s240_s25 = scalar_lea.vmem (!%p1422_p13), [#allocation2], %s695_s14 }
  0x5c   : > { %972 = dma.done.wait (%p1423_p3), %s237_s24, 128  }
  0x5d   : > { %974 = vsyncadd (%p1423_p3), %s237_s24, 4294967168  ;;  %s696_s0 = sshll.u32 %s1198_s12, 1  ;;  %s246_s13 = scalar_lea.sflag [#allocation6], %s1198_s12 }
  0x5e   : > { %s249_s9 = scalar_lea.vmem [#allocation5], %s696_s0 }
  0x5f   : > { %976 = dma.done.wait (%p1423_p3), %s246_s13, 32  }
  0x60   : > { %978 = vsyncadd (%p1423_p3), %s246_s13, 4294967264  ;;  %s697_s6 = sshll.u32 %s1198_s12, 2  ;;  %v1015_v0 = vmov 0.0   ;;  %vm301_vm0 = vcmask 1041408   ;;  %v296_v1 = vld [vmem:[%s240_s25] sm:$0x3] }
  0x61   : > { %s1213_s10 = scalar_lea.vmem [#allocation8], %s697_s6  ;;  %s1216_s8 = scalar_lea.vmem [#allocation7], %s697_s6  ;;  %v297_v2 = vld [vmem:[%s240_s25 + $0x2] sm:$0x3]  ;;  %v298_v3 = vld [vmem:[%s240_s25 + $0x4] sm:$0x3] }
  0x62   : > { %294 = vst [vmem:[%s1213_s10] sm:$0xf] %v1015_v0  ;;  %293 = vst [vmem:[%s1216_s8] sm:$0xf] %v1015_v0  ;;  %s1219_s11 = scalar_lea.vmem [#allocation10], %s697_s6  ;;  %v299_v4 = vld [vmem:[%s240_s25 + $0x6] sm:$0x3]  ;;  %v302_v5 = vsel %vm301_vm0, %v296_v1, -inf }
  0x63   : > { %295 = vst [vmem:[%s1219_s11] sm:$0xf] %v1015_v0  ;;  %v303_v6 = vsel %vm301_vm0, %v297_v2, -inf  ;;  %v304_v7 = vsel %vm301_vm0, %v298_v3, -inf  ;;  %v305_v8 = vsel %vm301_vm0, %v299_v4, -inf  ;;  %v1226_v10 = vld [vmem:[%s249_s9] sm:$0x3] }
  0x64   : > { %v306_v9 = vmax.f32 %v302_v5, %v303_v6  ;;  %v307_v11 = vmax.f32 %v304_v7, %v305_v8  ;;  %vm334_vm1 = vcmp.eq.s32.totalorder %v1226_v10, 0  ;;  %vm335_vm2 = vcmp.eq.s32.totalorder %v1226_v10, 1  ;;  %s475_s27 = sand.u32 1, %s1075_s21   ;;  %s1273_s22 = sshll.u32 %s1001_s18, 6 }
  0x65   : > { %vm336_vm3 = vcmp.eq.s32.totalorder %v1226_v10, 2  ;;  %vm337_vm4 = vcmp.eq.s32.totalorder %v1226_v10, 3  ;;  %v700_v12 = vsel %vm334_vm1, 1.0, %v1015_v0  ;;  %v701_v13 = vsel %vm335_vm2, 1.0, %v1015_v0  ;;  %s507_s5 = sshll.u32 %s1213_s10, 4  ;;  %s520_s7 = sshll.u32 %s1219_s11, 4  ;;  %s1285_s5 = int_to_ptr.vmem [resolvable:$true] %s507_s5  ;;  %s1287_s7 = int_to_ptr.vmem [resolvable:$true] %s520_s7 }
  0x66   : > { %v702_v14 = vsel %vm336_vm3, 1.0, %v1015_v0  ;;  %v308_v15 = vmax.f32 %v306_v9, %v307_v11  ;;  %v703_v16 = vsel %vm337_vm4, 1.0, %v1015_v0  ;;  %v432_v17 = vsel %vm301_vm0, %v700_v12, 0.0  ;;  %s1283_s26 = scalar_lea.hbm %s1408_s3, %s1273_s22  ;;  %s1293_s25 = scalar_lea.hbm %s1409_s4, %s1273_s22 }
  0x67   : > { %v439_v18 = vsel %vm301_vm0, %v701_v13, 0.0  ;;  %v433_v19 = vrot.slane %v432_v17, 4  ;;  %v446_v21 = vsel %vm301_vm0, %v702_v14, 0.0  ;;  %v453_v22 = vsel %vm301_vm0, %v703_v16, 0.0  ;;  %s494_s0 = sshll.u32 %s1216_s8, 4  ;;  %s1300_s13 = scalar_lea.sflag [#allocation9], %s475_s27  ;;  %s1355_s0 = int_to_ptr.vmem [resolvable:$true] %s494_s0 }
  0x68   : > { %v440_v20 = vrot.slane %v439_v18, 4  ;;  %v309_v23 = vsub.f32 %v296_v1, %v308_v15  ;;  %v310_v24 = vsub.f32 %v297_v2, %v308_v15  ;;  %v311_v25 = vsub.f32 %v298_v3, %v308_v15  ;;  %s863_s9 = scalar_lea.vmem %s1285_s5, 64  ;;  %p1424_p0 = scmp.ne.s32.totalorder %s1416_s28, 0 }
  0x69   : > { %v312_v26 = vsub.f32 %v299_v4, %v308_v15  ;;  %v434_v27 = vadd.f32 %v433_v19, %v432_v17  ;;  %v447_v29 = vrot.slane %v446_v21, 4  ;;  %v454_v30 = vrot.slane %v453_v22, 4  ;;  %p864_p8 = scmp.ne.s32.totalorder %s1285_s5, %s863_s9  ;;  %s1016_s6 = smov [#allocation8]  }
  0x6a   : > { %v441_v28 = vadd.f32 %v440_v20, %v439_v18  ;;  %v313_v31 = vmul.f32 1.442695, %v309_v23  ;;  %v315_v32 = vmul.f32 1.442695, %v310_v24  ;;  %v317_v33 = vmul.f32 1.442695, %v311_v25 }
  0x6b   : > { %v319_v34 = vmul.f32 1.442695, %v312_v26  ;;  %v435_v35 = vrot.slane %v434_v27, 2  ;;  %v448_v37 = vadd.f32 %v447_v29, %v446_v21  ;;  %v455_v38 = vadd.f32 %v454_v30, %v453_v22  ;;  %v423_v53 = vld [vmem:[%s1219_s11] sm:$0xf]  ;;  %p865_p11 = pnand %p864_p8, %p1424_p0 }
  0x6c   : > { %v442_v36 = vrot.slane %v441_v28, 2  ;;  %793 = vpow2.f32 %v313_v31  ;;  %vm375_vm5 = vcmask 1041409   ;;  %vm377_vm6 = vcmask 1042434  }
  0x6d   : > { %795 = vpow2.f32 %v315_v32  ;;  %v436_v39 = vadd.f32 %v435_v35, %v434_v27  ;;  %v449_v41 = vrot.slane %v448_v37, 2  ;;  %v456_v42 = vrot.slane %v455_v38, 2  ;;  %p866_p4 = pneg %p865_p11 }
  0x6e   : > { %v443_v40 = vadd.f32 %v442_v36, %v441_v28  ;;  %797 = vpow2.f32 %v317_v33  ;;  %vm379_vm7 = vcmask 1043459  }
  0x6f   : > { %799 = vpow2.f32 %v319_v34  ;;  %v437_v43 = vrot.slane %v436_v39, 1  ;;  %v450_v45 = vadd.f32 %v449_v41, %v448_v37  ;;  %v457_v46 = vadd.f32 %v456_v42, %v455_v38 }
  0x70   : > { %v444_v44 = vrot.slane %v443_v40, 1 }
  0x71   : > { %v438_v47 = vadd.f32 %v437_v43, %v436_v39  ;;  %v451_v49 = vrot.slane %v450_v45, 1  ;;  %v458_v50 = vrot.slane %v457_v46, 1 }
  0x72   : > { %v445_v48 = vadd.f32 %v444_v44, %v443_v40 }
  0x73   : > { %v452_v51 = vadd.f32 %v451_v49, %v450_v45  ;;  %v459_v54 = vadd.f32 %v458_v50, %v457_v46 }
  0x74   : > { %v464_v52 = vsel %vm375_vm5, %v445_v48, %v438_v47 }
  0x75   : > { %v465_v55 = vsel %vm377_vm6, %v452_v51, %v464_v52 }
  0x76   : > { %v794_v56 = vpop.eup %793  ;;  %v466_v57 = vsel %vm379_vm7, %v459_v54, %v465_v55 }
  0x77   : > { %v796_v58 = vpop.eup %795  ;;  %v321_v59 = vsel %vm301_vm0, %v794_v56, 0.0  ;;  %v468_v60 = vadd.f32 %v466_v57, %v423_v53 }
  0x78   : > { %v798_v61 = vpop.eup %797  ;;  %v322_v62 = vsel %vm301_vm0, %v796_v58, 0.0 }
  0x79   : > { %v800_v63 = vpop.eup %799  ;;  %v323_v0 = vadd.f32 %v322_v62, %v321_v59  ;;  %v324_v1 = vsel %vm301_vm0, %v798_v61, 0.0  ;;  %469 = vst [vmem:[%s1219_s11] sm:$0xf] %v468_v60  ;;  %v384_v62 = vld [vmem:[%s1213_s10] sm:$0xf]  ;;  %s867_s11 = sshll.u32 %s1016_s6, 4  ;;  %s868_s11 = int_to_ptr.vmem [resolvable:$false] %s867_s11 }
  0x7a   : > { %v326_v2 = vsel %vm301_vm0, %v800_v63, 0.0  ;;  %s869_s18 = scalar_lea.vmem %s868_s11, 128  ;;  %p870_p7 = scmp.lt.s32.totalorder %s1285_s5, %s868_s11 }
  0x7b   : > { %v325_v3 = vadd.f32 %v324_v1, %v323_v0  ;;  %p871_p10 = scmp.lt.s32.totalorder %s869_s18, %s863_s9 }
  0x7d   : > { %v327_v4 = vadd.f32 %v326_v2, %v325_v3  ;;  %p872_p12 = por %p871_p10, %p870_p7 }
  0x7f   : > { %801 = vrcp.f32 %v327_v4  ;;  %p873_p9 = pnand %p872_p12, %p866_p4 }
  0x89   : > { %v802_v5 = vpop.eup %801 }
  0x8a   : > { %v330_v6 = vmul.f32 %v802_v5, %v794_v56  ;;  %v331_v7 = vmul.f32 %v802_v5, %v796_v58  ;;  %v332_v8 = vmul.f32 %v802_v5, %v798_v61  ;;  %v333_v9 = vmul.f32 %v802_v5, %v800_v63 }
  0x8c   : > { %v385_v11 = vsel %vm301_vm0, %v330_v6, 0.0  ;;  %v392_v12 = vsel %vm301_vm0, %v331_v7, 0.0  ;;  %v399_v13 = vsel %vm301_vm0, %v332_v8, 0.0  ;;  %v406_v14 = vsel %vm301_vm0, %v333_v9, 0.0 }
  0x8d   : > { %v386_v15 = vrot.slane %v385_v11, 4  ;;  %v393_v16 = vrot.slane %v392_v12, 4  ;;  %v400_v17 = vrot.slane %v399_v13, 4  ;;  %v407_v18 = vrot.slane %v406_v14, 4 }
  0x8e   : > { %v339_v19 = vsel %vm334_vm1, %v330_v6, 0.0  ;;  %v340_v20 = vsel %vm335_vm2, %v331_v7, 0.0  ;;  %v341_v21 = vsel %vm336_vm3, %v332_v8, 0.0  ;;  %v342_v22 = vsel %vm337_vm4, %v333_v9, 0.0 }
  0x8f   : > { %v387_v23 = vadd.f32 %v386_v15, %v385_v11  ;;  %v394_v24 = vadd.f32 %v393_v16, %v392_v12  ;;  %v401_v25 = vadd.f32 %v400_v17, %v399_v13  ;;  %v408_v26 = vadd.f32 %v407_v18, %v406_v14  ;;  %v338_v12 = vld [vmem:[%s1216_s8] sm:$0xf] }
  0x90   : > { %v343_v27 = vsel %vm301_vm0, %v339_v19, 0.0  ;;  %v350_v28 = vsel %vm301_vm0, %v340_v20, 0.0  ;;  %v357_v29 = vsel %vm301_vm0, %v341_v21, 0.0  ;;  %v364_v30 = vsel %vm301_vm0, %v342_v22, 0.0 }
  0x91   : > { %v388_v31 = vrot.slane %v387_v23, 2  ;;  %v395_v32 = vrot.slane %v394_v24, 2  ;;  %v402_v33 = vrot.slane %v401_v25, 2  ;;  %v409_v34 = vrot.slane %v408_v26, 2 }
  0x92   : > { %v344_v35 = vrot.slane %v343_v27, 4  ;;  %v351_v36 = vrot.slane %v350_v28, 4  ;;  %v358_v10 = vrot.slane %v357_v29, 4  ;;  %v365_v37 = vrot.slane %v364_v30, 4 }
  0x93   : > { %v389_v38 = vadd.f32 %v388_v31, %v387_v23  ;;  %v396_v39 = vadd.f32 %v395_v32, %v394_v24  ;;  %v403_v40 = vadd.f32 %v402_v33, %v401_v25  ;;  %v410_v41 = vadd.f32 %v409_v34, %v408_v26 }
  0x94   : > { %v345_v42 = vadd.f32 %v344_v35, %v343_v27  ;;  %v352_v43 = vadd.f32 %v351_v36, %v350_v28  ;;  %v359_v44 = vadd.f32 %v358_v10, %v357_v29  ;;  %v366_v45 = vadd.f32 %v365_v37, %v364_v30 }
  0x95   : > { %v390_v46 = vrot.slane %v389_v38, 1  ;;  %v397_v47 = vrot.slane %v396_v39, 1  ;;  %v404_v48 = vrot.slane %v403_v40, 1  ;;  %v411_v49 = vrot.slane %v410_v41, 1 }
  0x96   : > { %v346_v50 = vrot.slane %v345_v42, 2  ;;  %v353_v51 = vrot.slane %v352_v43, 2  ;;  %v360_v52 = vrot.slane %v359_v44, 2  ;;  %v367_v53 = vrot.slane %v366_v45, 2 }
  0x97   : > { %v391_v54 = vadd.f32 %v390_v46, %v389_v38  ;;  %v398_v55 = vadd.f32 %v397_v47, %v396_v39  ;;  %v405_v56 = vadd.f32 %v404_v48, %v403_v40  ;;  %v412_v57 = vadd.f32 %v411_v49, %v410_v41 }
  0x98   : > { %v347_v58 = vadd.f32 %v346_v50, %v345_v42  ;;  %v354_v59 = vadd.f32 %v353_v51, %v352_v43  ;;  %v361_v60 = vadd.f32 %v360_v52, %v359_v44  ;;  %v368_v61 = vadd.f32 %v367_v53, %v366_v45 }
  0x99   : > { %v417_v63 = vsel %vm375_vm5, %v398_v55, %v391_v54 }
  0x9a   : > { %v418_v0 = vsel %vm377_vm6, %v405_v56, %v417_v63  ;;  %v348_v1 = vrot.slane %v347_v58, 1  ;;  %v355_v2 = vrot.slane %v354_v59, 1  ;;  %v362_v3 = vrot.slane %v361_v60, 1 }
  0x9b   : > { %v419_v4 = vsel %vm379_vm7, %v412_v57, %v418_v0  ;;  %v369_v5 = vrot.slane %v368_v61, 1 }
  0x9c   : > { %v421_v6 = vadd.f32 %v419_v4, %v384_v62  ;;  %v349_v7 = vadd.f32 %v348_v1, %v347_v58  ;;  %v356_v8 = vadd.f32 %v355_v2, %v354_v59  ;;  %v363_v9 = vadd.f32 %v362_v3, %v361_v60 }
  0x9d   : > { %v370_v11 = vadd.f32 %v369_v5, %v368_v61 }
  0x9e   : > { %422 = vst [vmem:[%s1213_s10] sm:$0xf] %v421_v6  ;;  %v376_v13 = vsel %vm375_vm5, %v356_v8, %v349_v7 }
  0x9f   : > { %v378_v14 = vsel %vm377_vm6, %v363_v9, %v376_v13 }
  0xa0   : > { %876 = shalt.err (!%p873_p9)
}
  0xa1   : > { %s877_s10 = scalar_lea.hbm %s1283_s26, 64  ;;  %s881_s14 = scalar_lea.hbm %s1408_s3, 128 }
  0xa2   : > { %p878_p1 = scmp.ne.s32.totalorder %s1283_s26, %s877_s10  ;;  %p882_p5 = scmp.lt.u32.totalorder %s1283_s26, %s1408_s3 }
  0xa3   : > { %p883_p13 = scmp.lt.u32.totalorder %s881_s14, %s877_s10  ;;  %p885_p8 = scmp.lt.u32.totalorder %s877_s10, %s1283_s26 }
  0xa4   : > { %p879_p6 = pnand %p878_p1, %p1424_p0 }
  0xa5   : > { %p884_p3 = por %p883_p13, %p882_p5 }
  0xa6   : > { %p880_p2 = pneg %p879_p6 }
  0xa7   : > { %p886_p11 = por %p885_p8, %p884_p3 }
  0xa9   : > { %p887_p4 = pnand %p886_p11, %p880_p2 }
  0xab   : > { %890 = shalt.err (!%p887_p4)
}
  0xac   : > { %718 = dma.vmem_to_hbm [thread:$0]  (%p1424_p0), %s1285_s5, 64, %s1283_s26, %s1300_s13   ;;  %v380_v15 = vsel %vm379_vm7, %v370_v11, %v378_v14 }
  0xad   : > { %s891_s9 = scalar_lea.vmem %s1287_s7, 64  ;;  %s1017_s11 = smov [#allocation10]  }
  0xae   : > { %p892_p7 = scmp.ne.s32.totalorder %s1287_s7, %s891_s9  ;;  %s895_s18 = sshll.u32 %s1017_s11, 4  ;;  %s896_s18 = int_to_ptr.vmem [resolvable:$false] %s895_s18 }
  0xaf   : > { %s897_s10 = scalar_lea.vmem %s896_s18, 128  ;;  %p898_p9 = scmp.lt.s32.totalorder %s1287_s7, %s896_s18 }
  0xb0   : > { %p893_p10 = pnand %p892_p7, %p1424_p0  ;;  %p899_p1 = scmp.lt.s32.totalorder %s897_s10, %s891_s9 }
  0xb2   : > { %p894_p12 = pneg %p893_p10  ;;  %p900_p6 = por %p899_p1, %p898_p9 }
  0xb4   : > { %p901_p2 = pnand %p900_p6, %p894_p12 }
  0xb6   : > { %904 = shalt.err (!%p901_p2)
}
  0xb7   : > { %s905_s5 = scalar_lea.hbm %s1293_s25, 64  ;;  %s909_s21 = scalar_lea.hbm %s1409_s4, 128 }
  0xb8   : > { %p906_p5 = scmp.ne.s32.totalorder %s1293_s25, %s905_s5  ;;  %p910_p8 = scmp.lt.u32.totalorder %s1293_s25, %s1409_s4 }
  0xb9   : > { %p911_p11 = scmp.lt.u32.totalorder %s909_s21, %s905_s5  ;;  %p913_p7 = scmp.lt.u32.totalorder %s905_s5, %s1293_s25 }
  0xba   : > { %p907_p13 = pnand %p906_p5, %p1424_p0 }
  0xbb   : > { %p912_p4 = por %p911_p11, %p910_p8 }
  0xbc   : > { %p908_p3 = pneg %p907_p13 }
  0xbd   : > { %p914_p10 = por %p913_p7, %p912_p4 }
  0xbf   : > { %p915_p12 = pnand %p914_p10, %p908_p3 }
  0xc1   : > { %918 = shalt.err (!%p915_p12)
}
  0xc2   : > { %719 = dma.vmem_to_hbm [thread:$0]  (%p1424_p0), %s1287_s7, 64, %s1293_s25, %s1300_s13   ;;  %v382_v16 = vadd.f32 %v380_v15, %v338_v12 }
  0xc3   : > { %s1351_s11 = scalar_lea.hbm %s1407_s2, %s1273_s22  ;;  %s471_s18 = scalar_lea.sflag [#allocation4], %s1198_s12 }
  0xc4   : > { %383 = vst [vmem:[%s1216_s8] sm:$0xf] %v382_v16  ;;  %s919_s10 = scalar_lea.vmem %s1355_s0, 64  ;;  %s1018_s7 = smov [#allocation7]  }
  0xc5   : > { %p920_p9 = scmp.ne.s32.totalorder %s1355_s0, %s919_s10  ;;  %s923_s25 = sshll.u32 %s1018_s7, 4  ;;  %s924_s25 = int_to_ptr.vmem [resolvable:$false] %s923_s25 }
  0xc6   : > { %s925_s13 = scalar_lea.vmem %s924_s25, 128  ;;  %p926_p2 = scmp.lt.s32.totalorder %s1355_s0, %s924_s25 }
  0xc7   : > { %p921_p1 = pnand %p920_p9, %p1424_p0  ;;  %p927_p5 = scmp.lt.s32.totalorder %s925_s13, %s919_s10 }
  0xc9   : > { %p922_p6 = pneg %p921_p1  ;;  %p928_p13 = por %p927_p5, %p926_p2 }
  0xcb   : > { %p929_p3 = pnand %p928_p13, %p922_p6 }
  0xcd   : > { %932 = shalt.err (!%p929_p3)
}
  0xce   : > { %s933_s12 = scalar_lea.hbm %s1351_s11, 64  ;;  %s937_s5 = scalar_lea.hbm %s1407_s2, 128 }
  0xcf   : > { %p934_p8 = scmp.ne.s32.totalorder %s1351_s11, %s933_s12  ;;  %p938_p7 = scmp.lt.u32.totalorder %s1351_s11, %s1407_s2 }
  0xd0   : > { %p939_p10 = scmp.lt.u32.totalorder %s937_s5, %s933_s12  ;;  %p941_p9 = scmp.lt.u32.totalorder %s933_s12, %s1351_s11 }
  0xd1   : > { %p935_p11 = pnand %p934_p8, %p1424_p0 }
  0xd2   : > { %p940_p12 = por %p939_p10, %p938_p7 }
  0xd3   : > { %p936_p4 = pneg %p935_p11 }
  0xd4   : > { %p942_p1 = por %p941_p9, %p940_p12 }
  0xd6   : > { %p943_p6 = pnand %p942_p1, %p936_p4 }
  0xd8   : > { %946 = shalt.err (!%p943_p6)
}
  0xd9   : > { %717 = dma.vmem_to_hbm [thread:$0]  (%p1424_p0), %s1355_s0, 64, %s1351_s11, %s471_s18  }
  0xda PF: > { %s532_s21 = sand.u32 1, %s989_s15   ;;  %p1425_p2 = scmp.ne.s32.totalorder %s1417_s30, 0 }
  0xdb   : > { %p1426_p5 = scmp.ge.s32.totalorder %s1009_s20, 2  ;;  %s533_s14 = scalar_lea.sflag [#allocation4], %s532_s21 }
  0xdd   : > { %p731_p13 = pnand %p1426_p5, %p1425_p2 }
  0xdf   : > { %980 = dma.done.wait (!%p731_p13), %s533_s14, 64  }
  0xe0   : > { %982 = vsyncadd (!%p731_p13), %s533_s14, 4294967232  ;;  %s1427_s24 = sadd.s32 4294967294, %s1009_s20  }
  0xe1   : > { %s541_s6 = sand.u32 1, %s1427_s24  }
  0xe2   : > { %s542_s9 = scalar_lea.sflag [#allocation9], %s541_s6 }
  0xe3   : > { %984 = dma.done.wait (!%p731_p13), %s542_s9, 128  }
  0xe4   : > { %986 = vsyncadd (!%p731_p13), %s542_s9, 4294967168  ;;  %s27_s20 = sadd.s32 1, %s1009_s20   ;;  %s1428_s15 = smov %s993_s16 }
  0xe5   : > { %p24_p0 = scmp.ge.s32.totalorder %s27_s20, 4   ;;  %s1429_s16 = smov %s997_s17 }
  0xe6   : > { %s1430_s17 = smov %s1106_s29  ;;  %s1431_s18 = smov %s1005_s19 }
  0xe7   : > { %s1432_s19 = smov %s1434_s23  ;;  %26 = sbr.rel (!%p24_p0) target bundleno = 12 (0xc), region = 122 }
  0xee   :  { %556 = vsyncpa [#allocation3], 1 }
  0xef   :  { %558 = vsyncpa [#allocation3 + $0x1], 1 }
  0xf0   :  { %559 = vsyncpa [#allocation6], 1 }
  0xf1   :  { %561 = vsyncpa [#allocation6 + $0x1], 1 }
  0xf2   :  { %562 = vsyncpa [#allocation4], 1 }
  0xf3   :  { %564 = vsyncpa [#allocation4 + $0x1], 1 }
  0xf4   :  { %565 = vsyncpa [#allocation9], 1 }
  0xf5   :  { %567 = vsyncpa [#allocation9 + $0x1], 1 }

</bundles_post_ra>
